<compile_context>
chip_gen: v5e
topology: v5e:2x2
jax: 0.10.0
libtpu: 0.0.40
codegen_flags: <defaults>
</compile_context>

<pallas_src>
import functools

import jax
import jax.numpy as jnp
from jax import lax
from jax.experimental import pallas as pl
from jax.experimental.pallas import tpu as pltpu


def _add_norm_kernel(seed_ref, x_ref, y_ref, g_ref, b_ref, o_ref, *,
                     eps, inv_hidden, apply_dropout, keep_threshold, inv_keep):
    y = y_ref[...].astype(jnp.float32)

    if apply_dropout:
        # Inverted dropout with the hardware PRNG; integer-threshold compare
        # (no uint32 -> f32 convert, exactly unbiased).  Seed is a runtime
        # scalar, offset per grid step for distinct per-tile streams.
        pltpu.prng_seed(seed_ref[0] + pl.program_id(0))
        bits = pltpu.prng_random_bits(y.shape)
        if bits.dtype != jnp.uint32:          # trace-time check; no-op if already u32
            bits = pltpu.bitcast(bits, jnp.uint32)
        keep = bits >= jnp.uint32(keep_threshold)
        y = jnp.where(keep, y * inv_keep, 0.0)

    z = y + x_ref[...].astype(jnp.float32)

    # LayerNorm over the last (lane) dim — two-pass mean/variance in VMEM.
    # Compute is free under the DMA bound and this avoids the single-pass
    # cancellation issue for large-offset inputs.
    mean = jnp.sum(z, axis=-1, keepdims=True) * inv_hidden
    zc = z - mean
    var = jnp.sum(zc * zc, axis=-1, keepdims=True) * inv_hidden
    z_hat = zc * lax.rsqrt(var + eps)

    # gamma/beta are already f32, shape (1, H) -> broadcast over rows.
    o_ref[...] = (z_hat * g_ref[...] + b_ref[...]).astype(o_ref.dtype)


def _pick_row_tile(rows, hidden, dtype_bytes):
    """Pick (row_tile, vmem_limit_bytes) from a per-generation VMEM budget."""
    try:
        vmem_cap = int(pltpu.get_tpu_info().vmem_capacity_bytes)
    except Exception:
        vmem_cap = 64 << 20  # conservative fallback (v7x-sized)
    if vmem_cap <= (64 << 20):      # v7x: 64 MiB per TensorCore
        vmem_limit = 48 << 20
    else:                           # v5e / v6e: 128 MiB physical VMEM
        vmem_limit = 64 << 20

    # Per-row VMEM footprint: X, Y, out double-buffered at the input dtype
    # plus ~2 row_tile x hidden f32 intermediates (z / normalized result).
    bytes_per_row = hidden * (6 * dtype_bytes + 2 * 4)
    rt = int(vmem_limit * 0.75) // max(bytes_per_row, 1)
    rt = max(8, (rt // 8) * 8)

    # Keep >= 4 grid steps where possible (>= 2 per v7x TensorCore) so DMA
    # prefetch / writeback overlap with compute within each core.
    quarter = ((max(1, -(-rows // 4)) + 7) // 8) * 8
    return max(8, min(rt, quarter)), vmem_limit


def add_norm(x, y, gamma, beta, *, dropout_rate=0.0, train=False,
             eps=1e-5, seed=0, row_tile=None):
    """AddNorm forward: LayerNorm(dropout(Y) + X) over the last dim."""
    assert x.shape == y.shape
    assert 0.0 <= dropout_rate < 1.0, "dropout_rate must be in [0, 1)"
    orig_shape = x.shape
    hidden = orig_shape[-1]
    rows = 1
    for d in orig_shape[:-1]:
        rows *= d

    x2 = x.reshape(rows, hidden)
    y2 = y.reshape(rows, hidden)
    g2 = gamma.reshape(1, hidden).astype(jnp.float32)
    b2 = beta.reshape(1, hidden).astype(jnp.float32)

    dtype_bytes = jnp.dtype(x.dtype).itemsize
    if row_tile is None:
        row_tile, vmem_limit = _pick_row_tile(rows, hidden, dtype_bytes)
    else:
        vmem_limit = 48 << 20

    grid_m = pl.cdiv(rows, row_tile)   # edge block (if any) is masked by Pallas

    apply_dropout = bool(train) and dropout_rate > 0.0
    keep_threshold = 0
    inv_keep = 1.0
    if apply_dropout:
        keep_threshold = min(int(dropout_rate * 4294967296.0), 4294967295)
        inv_keep = 1.0 / (1.0 - dropout_rate)

    # Seed as a runtime SMEM scalar (scalar prefetch): changing it per training
    # step reuses the same compiled kernel.
    seed_arr = jnp.asarray(seed, dtype=jnp.int32).reshape((1,))

    kernel = functools.partial(
        _add_norm_kernel,
        eps=eps, inv_hidden=1.0 / hidden, apply_dropout=apply_dropout,
        keep_threshold=keep_threshold, inv_keep=inv_keep)

    cost = pl.CostEstimate(
        flops=9 * rows * hidden,
        transcendentals=rows,
        bytes_accessed=(3 * rows * hidden + 2 * hidden) * dtype_bytes)

    out = pl.pallas_call(
        kernel,
        out_shape=jax.ShapeDtypeStruct((rows, hidden), x.dtype),
        grid_spec=pltpu.PrefetchScalarGridSpec(
            num_scalar_prefetch=1,
            grid=(grid_m,),
            in_specs=[
                pl.BlockSpec((row_tile, hidden), lambda i, s: (i, 0)),  # X
                pl.BlockSpec((row_tile, hidden), lambda i, s: (i, 0)),  # Y
                pl.BlockSpec((1, hidden), lambda i, s: (0, 0)),         # gamma (resident)
                pl.BlockSpec((1, hidden), lambda i, s: (0, 0)),         # beta  (resident)
            ],
            out_specs=pl.BlockSpec((row_tile, hidden), lambda i, s: (i, 0)),
        ),
        compiler_params=pltpu.CompilerParams(
            dimension_semantics=("parallel",),
            vmem_limit_bytes=vmem_limit),
        cost_estimate=cost,
    )(seed_arr, x2, y2, g2, b2)

    return out.reshape(orig_shape)


def add_norm_ref(x, y, gamma, beta, eps=1e-5):
    z = (y + x).astype(jnp.float32)
    mean = jnp.mean(z, axis=-1, keepdims=True)
    var = jnp.mean((z - mean) ** 2, axis=-1, keepdims=True)
    return ((z - mean) / jnp.sqrt(var + eps)) * gamma + beta


if __name__ == "__main__":
    # Shapes consistent with the module's usage: X, Y of shape (batch, seq, hidden),
    # nn.LayerNorm(normalized_shape=hidden).
    batch, seq, hidden = 2, 8, 32
    dropout_rate = 0.1  # eval mode -> nn.Dropout is identity (inference parity)

    key = jax.random.PRNGKey(0)
    kx, ky = jax.random.split(key)
    x = jax.random.normal(kx, (batch, seq, hidden), dtype=jnp.float32)
    y = jax.random.normal(ky, (batch, seq, hidden), dtype=jnp.float32)

    # nn.LayerNorm default init: weight = 1, bias = 0 (deterministic).
    gamma = jnp.ones((hidden,), dtype=jnp.float32)
    beta = jnp.zeros((hidden,), dtype=jnp.float32)

    out = add_norm(x, y, gamma, beta, dropout_rate=dropout_rate, train=False)
    out = jax.block_until_ready(out)

    ref = add_norm_ref(x, y, gamma, beta)
    assert out.shape == (batch, seq, hidden)
    assert jnp.allclose(out, ref, atol=1e-5, rtol=1e-5), "mismatch vs reference"

    print("KERNEL_OK")
</pallas_src>

<mosaic_0001>
module attributes {stable_mosaic.version = 11 : i64} {
  func.func @_add_norm_kernel(%arg0: i32, %arg1: memref<1xi32, #tpu.memory_space<smem>>, %arg2: memref<8x32xf32, #tpu.memory_space<vmem>>, %arg3: memref<8x32xf32, #tpu.memory_space<vmem>>, %arg4: memref<1x32xf32, #tpu.memory_space<vmem>>, %arg5: memref<1x32xf32, #tpu.memory_space<vmem>>, %arg6: memref<8x32xf32, #tpu.memory_space<vmem>>) attributes {dimension_semantics = [#tpu.dimension_semantics<parallel>], iteration_bounds = array<i64: 2>, scalar_prefetch = 1 : i64, scratch_operands = 0 : i64, tpu.core_type = #tpu.core_type<tc>, window_params = [{transform_indices = @transform_0, window_bounds = array<i64: 8, 32>}, {transform_indices = @transform_1, window_bounds = array<i64: 8, 32>}, {pipeline_mode = #tpu.pipeline_mode<synchronous>, transform_indices = @transform_2, window_bounds = array<i64: 1, 32>}, {pipeline_mode = #tpu.pipeline_mode<synchronous>, transform_indices = @transform_3, window_bounds = array<i64: 1, 32>}, {transform_indices = @transform_4, window_bounds = array<i64: 8, 32>}]} {
    %c0 = arith.constant 0 : index
    %c0_0 = arith.constant 0 : index
    %0 = vector.load %arg3[%c0, %c0_0] : memref<8x32xf32, #tpu.memory_space<vmem>>, vector<8x32xf32>
    %c0_1 = arith.constant 0 : index
    %c0_2 = arith.constant 0 : index
    %1 = vector.load %arg2[%c0_1, %c0_2] : memref<8x32xf32, #tpu.memory_space<vmem>>, vector<8x32xf32>
    %2 = arith.addf %0, %1 : vector<8x32xf32>
    %cst = arith.constant dense<0.000000e+00> : vector<8xf32>
    %3 = vector.multi_reduction <add>, %2, %cst [1] : vector<8x32xf32> to vector<8xf32>
    %4 = vector.shape_cast %3 : vector<8xf32> to vector<8x1xf32>
    %cst_3 = arith.constant 3.125000e-02 : f32
    %5 = vector.broadcast %cst_3 : f32 to vector<8x1xf32>
    %6 = arith.mulf %4, %5 : vector<8x1xf32>
    %7 = vector.broadcast %6 : vector<8x1xf32> to vector<8x32xf32>
    %8 = arith.subf %2, %7 : vector<8x32xf32>
    %9 = arith.mulf %8, %8 : vector<8x32xf32>
    %cst_4 = arith.constant dense<0.000000e+00> : vector<8xf32>
    %10 = vector.multi_reduction <add>, %9, %cst_4 [1] : vector<8x32xf32> to vector<8xf32>
    %11 = vector.shape_cast %10 : vector<8xf32> to vector<8x1xf32>
    %cst_5 = arith.constant 3.125000e-02 : f32
    %12 = vector.broadcast %cst_5 : f32 to vector<8x1xf32>
    %13 = arith.mulf %11, %12 : vector<8x1xf32>
    %cst_6 = arith.constant 9.99999974E-6 : f32
    %14 = vector.broadcast %cst_6 : f32 to vector<8x1xf32>
    %15 = arith.addf %13, %14 : vector<8x1xf32>
    %16 = math.rsqrt %15 : vector<8x1xf32>
    %17 = vector.broadcast %16 : vector<8x1xf32> to vector<8x32xf32>
    %18 = arith.mulf %8, %17 : vector<8x32xf32>
    %c0_7 = arith.constant 0 : index
    %c0_8 = arith.constant 0 : index
    %19 = vector.load %arg4[%c0_7, %c0_8] : memref<1x32xf32, #tpu.memory_space<vmem>>, vector<1x32xf32>
    %20 = vector.broadcast %19 : vector<1x32xf32> to vector<8x32xf32>
    %21 = arith.mulf %18, %20 : vector<8x32xf32>
    %c0_9 = arith.constant 0 : index
    %c0_10 = arith.constant 0 : index
    %22 = vector.load %arg5[%c0_9, %c0_10] : memref<1x32xf32, #tpu.memory_space<vmem>>, vector<1x32xf32>
    %23 = vector.broadcast %22 : vector<1x32xf32> to vector<8x32xf32>
    %24 = arith.addf %21, %23 : vector<8x32xf32>
    %c0_11 = arith.constant 0 : index
    %c0_12 = arith.constant 0 : index
    %25 = vector.load %arg6[%c0_11, %c0_12] : memref<8x32xf32, #tpu.memory_space<vmem>>, vector<8x32xf32>
    tpu.vector_store %arg6[%c0_11, %c0_12], %24 {strides = array<i32>} : memref<8x32xf32, #tpu.memory_space<vmem>>, vector<8x32xf32>,
    return
  }
  func.func @transform_0(%arg0: i32, %arg1: memref<1xi32, #tpu.memory_space<smem>>) -> (i32, i32) {
    %c0_i32 = arith.constant 0 : i32
    %c0_i32_0 = arith.constant 0 : i32
    return %arg0, %c0_i32 : i32, i32
  }
  func.func @transform_1(%arg0: i32, %arg1: memref<1xi32, #tpu.memory_space<smem>>) -> (i32, i32) {
    %c0_i32 = arith.constant 0 : i32
    %c0_i32_0 = arith.constant 0 : i32
    return %arg0, %c0_i32 : i32, i32
  }
  func.func @transform_2(%arg0: i32, %arg1: memref<1xi32, #tpu.memory_space<smem>>) -> (i32, i32) {
    %c0_i32 = arith.constant 0 : i32
    %c0_i32_0 = arith.constant 0 : i32
    %c0_i32_1 = arith.constant 0 : i32
    return %c0_i32, %c0_i32_0 : i32, i32
  }
  func.func @transform_3(%arg0: i32, %arg1: memref<1xi32, #tpu.memory_space<smem>>) -> (i32, i32) {
    %c0_i32 = arith.constant 0 : i32
    %c0_i32_0 = arith.constant 0 : i32
    %c0_i32_1 = arith.constant 0 : i32
    return %c0_i32, %c0_i32_0 : i32, i32
  }
  func.func @transform_4(%arg0: i32, %arg1: memref<1xi32, #tpu.memory_space<smem>>) -> (i32, i32) {
    %c0_i32 = arith.constant 0 : i32
    %c0_i32_0 = arith.constant 0 : i32
    return %arg0, %c0_i32 : i32, i32
  }
}

</mosaic_0001>

<bundles_post_ra>
// kernel: tpu_custom_call.1
= control target key start
LH: loop header
LB: loop body
LE: loop exit
PB: predicated region body
PF: predicated region fallthrough
CT: control target
= control target key end

     0   :  { %s808_s0 = inlined_call_operand.<no memory space> [shape: s32[1], index: 0, kind: input, shape index: {}]   ;;  %s809_s1 = inlined_call_operand.hbm [shape: f32[16,32], index: 1, kind: input, shape index: {}]   ;;  %s810_s2 = inlined_call_operand.hbm [shape: f32[16,32], index: 2, kind: input, shape index: {}]   ;;  %s811_s3 = inlined_call_operand.vmem [shape: f32[1,32], index: 3, kind: input, shape index: {}]   ;;  %s812_s4 = inlined_call_operand.vmem [shape: f32[1,32], index: 4, kind: input, shape index: {}]   ;;  %s813_s5 = inlined_call_operand.hbm [shape: f32[16,32], index: 5, kind: output, shape index: {}]  }
   0x1   :  { %814 = sst [smem:[#allocation13_spill]] %s809_s1 }
   0x2   :  { %11 = vsyncpa [#allocation5], 0 }
   0x3   :  { %13 = vsyncpa [#allocation5 + $0x1], 0 }
   0x4   :  { %14 = vsyncpa [#allocation8], 0 }
   0x5   :  { %16 = vsyncpa [#allocation8 + $0x1], 0 }
   0x6   :  { %17 = vsyncpa [#allocation6], 0 }
   0x7   :  { %19 = vsyncpa [#allocation6 + $0x1], 0  ;;  %s634_s0 = smov 0   ;;  %s636_s18 = smov 0  }
   0x8   :  { %s638_s19 = smov 0   ;;  %s640_s20 = smov 0  }
   0x9 LB: > { %s655_s21 = sadd.s32 4294967295, %s602_s20   ;;  %s402_s22 = sadd.s32 4294967294, %s602_s20   ;;  %s602_s20 = sphi %s640_s20, %s826_s20   ;;  %s598_s19 = sphi %s638_s19, %s825_s19   ;;  %s594_s18 = sphi %s636_s18, %s824_s18   ;;  %s590_s0 = sphi %s634_s0, %s823_s0  }
   0xa   : > { %s659_s23 = sadd.s32 1, %s602_s20   ;;  %s32_s24 = sadd.s32 1, %s598_s19 }
   0xb   : > { %s29_s25 = ssub.s32 %s602_s20, %s659_s23  ;;  %p39_p0 = scmp.ne.s32.totalorder %s598_s19, %s594_s18 }
   0xc   : > { %p30_p1 = scmp.eq.s32.totalorder %s29_s25, 0  ;;  %p40_p2 = scmp.eq.s32.totalorder %s602_s20, 0 }
   0xd   : > { %p45_p3 = scmp.ne.s32.totalorder %s594_s18, %s590_s0  ;;  %p46_p4 = scmp.eq.s32.totalorder %s655_s21, 0 }
   0xe   : > { %s671_s26 = scalar_select %p30_p1, %s598_s19, %s32_s24  }
   0xf   : > { %p673_p5 = por %p40_p2, %p39_p0  ;;  %p677_p6 = por %p46_p4, %p45_p3 }
  0x10   : > { %p137_p7 = scmp.eq.s32.totalorder %s655_s21, 1  ;;  %p143_p8 = scmp.eq.s32.totalorder %s402_s22, 1 }
  0x11   : > { %p434_p10 = scmp.lt.s32.totalorder %s602_s20, 2  ;;  %s693_s6 = sand.u32 1, %s598_s19  }
  0x12   : > { %p684_p11 = por %p137_p7, %p39_p0  ;;  %p688_p12 = por %p143_p8, %p45_p3 }
  0x13   : > { %s406_s7 = sshll.u32 %s602_s20, 3  ;;  %s405_s8 = sshll.u32 %s693_s6, 3 }
  0x14   : > { %s819_s1 = sld [smem:[#allocation13_spill]]  ;;  %s173_s13 = scalar_lea.vmem [#allocation4], %s405_s8 }
  0x15   : > { %s181_s14 = sshll.u32 %s173_s13, 4  ;;  %p702_p13 = pnand %p434_p10, %p673_p5  ;;  %s182_s14 = int_to_ptr.vmem [resolvable:$true] %s181_s14 }
  0x16   : > { %p409_p0 = scmp.ge.s32.totalorder %s602_s20, 1  ;;  %p205_p1 = scmp.lt.s32.totalorder %s602_s20, 3 }
  0x17   : > { %s170_s16 = scalar_lea.sflag [#allocation5], %s693_s6  ;;  %p476_p3 = pneg %p702_p13 }
  0x1a   : > { %s177_s11 = scalar_lea.hbm %s819_s1, %s406_s7  ;;  %s479_s27 = scalar_lea.hbm %s819_s1, 16 }
  0x1b   : > { %s179_s12 = sshll.u32 %s177_s11, 4  ;;  %s180_s12 = int_to_ptr.hbm [resolvable:$true] %s179_s12 }
  0x1c   : > { %s472_s17 = sshra.s32 %s180_s12, 4  ;;  %s473_s17 = int_to_ptr.hbm [resolvable:$true] %s472_s17 }
  0x1d   : > { %s474_s22 = scalar_lea.hbm %s473_s17, 8  ;;  %p480_p5 = scmp.lt.s32.totalorder %s473_s17, %s819_s1 }
  0x1e   : > { %p475_p2 = scmp.ne.s32.totalorder %s473_s17, %s474_s22  ;;  %p481_p8 = scmp.lt.s32.totalorder %s479_s27, %s474_s22 }
  0x20   : > { %p477_p4 = pnand %p476_p3, %p475_p2  ;;  %p482_p10 = por %p481_p8, %p480_p5 }
  0x22   : > { %p478_p7 = pneg %p477_p4 }
  0x24   : > { %p483_p9 = pnand %p482_p10, %p478_p7 }
  0x26   : > { %486 = shalt.err (!%p483_p9)
}
  0x27   : > { %426 = dma.hbm_to_vmem [thread:$0]  (!%p702_p13), %s180_s12, 128, %s182_s14, %s170_s16  }
  0x28   : > { %p726_p2 = pnand %p409_p0, %p205_p1  ;;  %s196_s17 = scalar_lea.hbm %s810_s2, %s406_s7 }
  0x29   : > { %s198_s22 = sshll.u32 %s196_s17, 4  ;;  %s192_s25 = scalar_lea.vmem [#allocation7], %s405_s8  ;;  %s199_s22 = int_to_ptr.hbm [resolvable:$true] %s198_s22 }
  0x2a   : > { %s200_s27 = sshll.u32 %s192_s25, 4  ;;  %s189_s9 = scalar_lea.sflag [#allocation8], %s693_s6  ;;  %s201_s27 = int_to_ptr.vmem [resolvable:$true] %s200_s27 }
  0x2b   : > { %s502_s10 = sshra.s32 %s199_s22, 4  ;;  %s509_s16 = scalar_lea.hbm %s810_s2, 16  ;;  %s503_s10 = int_to_ptr.hbm [resolvable:$true] %s502_s10 }
  0x2c   : > { %s504_s1 = scalar_lea.hbm %s503_s10, 8  ;;  %p510_p4 = scmp.lt.s32.totalorder %s503_s10, %s810_s2 }
  0x2d   : > { %p505_p9 = scmp.ne.s32.totalorder %s503_s10, %s504_s1  ;;  %p511_p7 = scmp.lt.s32.totalorder %s509_s16, %s504_s1 }
  0x2f   : > { %p507_p0 = pnand %p505_p9, %p476_p3  ;;  %p512_p5 = por %p511_p7, %p510_p4 }
  0x31   : > { %p508_p1 = pneg %p507_p0 }
  0x33   : > { %p513_p8 = pnand %p512_p5, %p508_p1 }
  0x35   : > { %516 = shalt.err (!%p513_p8)
}
  0x36   : > { %429 = dma.hbm_to_vmem [thread:$0]  (!%p702_p13), %s199_s22, 128, %s201_s27, %s189_s9  }
  0x37   : > { %209 = sbr.rel (%p726_p2) target bundleno = 337 (0x151), region = 36  ;;  %s748_s6 = sand.u32 (!%p726_p2), 1, %s594_s18  }
  0x38   : > { %s751_s8 = sshll.u32 (!%p726_p2), %s748_s6, 3  ;;  %s212_s24 = scalar_lea.sflag (!%p726_p2), [#allocation5], %s748_s6 }
  0x39   : > { %s215_s1 = scalar_lea.vmem (!%p726_p2), [#allocation4], %s751_s8 }
  0x3c   : > { %577 = dma.done.wait (%p677_p6), %s212_s24, 128  }
  0x3d   : > { %579 = vsyncadd (%p677_p6), %s212_s24, 4294967168  ;;  %s222_s15 = scalar_lea.sflag [#allocation8], %s748_s6  ;;  %s225_s11 = scalar_lea.vmem [#allocation7], %s751_s8 }
  0x3e   : > { %581 = dma.done.wait (%p677_p6), %s222_s15, 128  }
  0x3f   : > { %583 = vsyncadd (%p677_p6), %s222_s15, 4294967168  ;;  %v256_v0 = vld [vmem:[%s225_s11] sm:$0xff]  ;;  %v257_v1 = vld [vmem:[%s215_s1] sm:$0xff]  ;;  %vm259_vm0 = vcmask 261120   ;;  %s414_s28 = sshll.u32 %s655_s21, 3  ;;  %s255_s21 = scalar_lea.vmem [#allocation9], %s751_s8 }
  0x40   : > { %v258_v2 = vadd.f32 %v257_v1, %v256_v0  ;;  %v468_v18 = vld [vmem:[%s811_s3] ss:$0 sm:$0xff]  ;;  %s304_s9 = scalar_lea.hbm %s813_s5, %s414_s28  ;;  %s306_s14 = sshll.u32 %s255_s21, 4  ;;  %s307_s14 = int_to_ptr.vmem [resolvable:$true] %s306_s14 }
  0x41   : > { %v469_v20 = vld [vmem:[%s812_s4] ss:$0 sm:$0xff]  ;;  %s308_s16 = sshll.u32 %s304_s9, 4  ;;  %s294_s13 = scalar_lea.sflag [#allocation6], %s748_s6  ;;  %s309_s16 = int_to_ptr.hbm [resolvable:$true] %s308_s16 }
  0x42   : > { %v260_v3 = vsel %vm259_vm0, %v258_v2, 0.0  ;;  %s546_s7 = sshra.s32 %s309_s16, 4  ;;  %s552_s8 = scalar_lea.hbm %s813_s5, 16  ;;  %s547_s7 = int_to_ptr.hbm [resolvable:$true] %s546_s7 }
  0x43   : > { %261 = vadd.xlane.f32.xlu0 %v260_v3  ;;  %s548_s24 = scalar_lea.hbm %s547_s7, 8  ;;  %p553_p10 = scmp.lt.s32.totalorder %s547_s7, %s813_s5 }
  0x44   : > { %p549_p6 = scmp.ne.s32.totalorder %s547_s7, %s548_s24  ;;  %p554_p2 = scmp.lt.s32.totalorder %s552_s8, %s548_s24 }
  0x46   : > { %p550_p13 = pnand %p549_p6, %p684_p11  ;;  %p555_p9 = por %p554_p2, %p553_p10 }
  0x48   : > { %p551_p3 = pneg %p550_p13 }
  0x4a   : > { %p556_p0 = pnand %p555_p9, %p551_p3 }
  0xb6   : > { %v262_v4 = vpop.xlane.xlu0 %261 }
  0xb7   : > { %v263_v5 = vmul.f32 0.03125, %v262_v4 }
  0xb9   : > { %v264_v6 = vsub.f32 %v258_v2, %v263_v5 }
  0xbb   : > { %v265_v7 = vmul.f32 %v264_v6, %v264_v6 }
  0xbd   : > { %v266_v8 = vsel %vm259_vm0, %v265_v7, 0.0 }
  0xbe   : > { %267 = vadd.xlane.f32.xlu0 %v266_v8 }
 0x131   : > { %v268_v9 = vpop.xlane.xlu0 %267 }
 0x132   : > { %v269_v10 = vmul.f32 0.03125, %v268_v9 }
 0x134   : > { %v270_v11 = vadd.f32 1e-05, %v269_v10 }
 0x136   : > { %470 = vrsqrt.f32 %v270_v11  ;;  %vm277_vm2 = vweird.f32 %v270_v11 }
 0x13c   : > { %v471_v12 = vpop.eup %470 }
 0x13d   : > { %v272_v13 = vmul.f32 %v471_v12, %v270_v11  ;;  %vm278_vm1 = vweird.f32 %v471_v12 }
 0x13e   : > { %vm279_vm3 = vmor %vm277_vm2, %vm278_vm1 }
 0x13f   : > { %v273_v14 = vmul.f32 %v471_v12, %v272_v13 }
 0x141   : > { %v274_v15 = vmul.f32 0.5, %v273_v14 }
 0x143   : > { %v275_v16 = vsub.f32 1.5, %v274_v15 }
 0x145   : > { %v276_v17 = vmul.f32 %v471_v12, %v275_v16 }
 0x147   : > { %v280_v19 = vsel %vm279_vm3, %v471_v12, %v276_v17 }
 0x148   : > { %v281_v21 = vmul.f32 %v280_v19, %v264_v6 }
 0x14a   : > { %v286_v22 = vmul.f32 %v468_v18, %v281_v21 }
 0x14c   : > { %v291_v23 = vadd.f32 %v469_v20, %v286_v22 }
 0x14e   : > { %292 = vst.msk [vmem:[%s255_s21] sm:$0xff] %vm259_vm0, %v291_v23 }
 0x14f   : > { %559 = shalt.err (!%p556_p0)
}
 0x150   : > { %421 = dma.vmem_to_hbm [thread:$0]  (%p684_p11), %s307_s14, 128, %s309_s16, %s294_s13  }
 0x151 PF: > { %s320_s6 = sand.u32 1, %s590_s0   ;;  %p822_p1 = scmp.ge.s32.totalorder %s602_s20, 2 }
 0x152   : > { %s321_s17 = scalar_lea.sflag [#allocation6], %s320_s6 }
 0x153   : > { %p431_p4 = pnand %p822_p1, %p688_p12 }
 0x155   : > { %p432_p7 = pneg %p431_p4 }
 0x157   : > { %585 = dma.done.wait (%p432_p7), %s321_s17, 128  }
 0x158   : > { %587 = vsyncadd (%p432_p7), %s321_s17, 4294967168  ;;  %p22_p5 = scmp.ge.s32.totalorder %s659_s23, 4   ;;  %s823_s0 = smov %s594_s18 }
 0x159   : > { %s824_s18 = smov %s598_s19  ;;  %s825_s19 = smov %s671_s26 }
 0x15a   : > { %s826_s20 = smov %s659_s23  ;;  %24 = sbr.rel (!%p22_p5) target bundleno = 9 (0x9), region = 94 }
 0x15f   :  { %327 = vsyncpa [#allocation5], 1 }
 0x160   :  { %329 = vsyncpa [#allocation5 + $0x1], 1 }
 0x161   :  { %330 = vsyncpa [#allocation8], 1 }
 0x162   :  { %332 = vsyncpa [#allocation8 + $0x1], 1 }
 0x163   :  { %333 = vsyncpa [#allocation6], 1 }
 0x164   :  { %335 = vsyncpa [#allocation6 + $0x1], 1 }

</bundles_post_ra>
